<compile_context>
chip_gen: v5e
topology: v5e:2x2
jax: 0.10.0
libtpu: 0.0.40
codegen_flags: <defaults>
</compile_context>

<pallas_src>
import jax
import jax.numpy as jnp
from jax.experimental import pallas as pl
from jax.experimental.pallas import tpu as pltpu


def _round_up(x, m):
    return ((x + m - 1) // m) * m


# ----------------------------- Pallas kernel ------------------------------ #

def _mlp_kernel(x_ref, w1_ref, b1_ref, w2_ref, b2_ref, o_ref):
    # x_ref  : (TB, Dp)   input rows for this batch tile
    # w1_ref : (Dp, Hp)   lin1 weight (transposed, zero-padded)
    # b1_ref : (1, Hp)    lin1 bias   (zero-padded)
    # w2_ref : (Hp, Lp)   lin2 weight (transposed, zero-padded)
    # b2_ref : (1, Lp)    lin2 bias   (zero-padded)
    # o_ref  : (TB, Lp)   output rows (lane-dense, padded)
    h = jnp.dot(x_ref[...], w1_ref[...], preferred_element_type=jnp.float32)
    h = jnp.maximum(h + b1_ref[...], 0.0)                      # bias + ReLU on VPU
    out = jnp.dot(h, w2_ref[...], preferred_element_type=jnp.float32)
    o_ref[...] = (out + b2_ref[...]).astype(o_ref.dtype)


# ------------------------------- wrapper ---------------------------------- #

class Encoder1DSentPallas:
    """Pallas TPU port of Encoder_1D_sent.forward (Linear -> ReLU -> Linear)."""

    def __init__(self, embed_dim, latent_dim, latent_dim_disc=0, key=None):
        self.embed_dim = embed_dim
        self.latent_dim = latent_dim
        self.latent_dim_disc = latent_dim_disc
        self.hidden = embed_dim // 2
        self.out_dim = 2 * latent_dim + latent_dim_disc

        D, H, L = self.embed_dim, self.hidden, self.out_dim

        # ---- deterministic synthetic parameters (PyTorch nn.Linear shapes) ----
        if key is None:
            key = jax.random.PRNGKey(0)
        k1, k2, k3, k4 = jax.random.split(key, 4)
        s1 = 1.0 / jnp.sqrt(jnp.float32(D))
        s2 = 1.0 / jnp.sqrt(jnp.float32(H))
        self.W1 = s1 * jax.random.normal(k1, (H, D), jnp.float32)   # lin1.weight
        self.b1 = s1 * jax.random.normal(k2, (H,), jnp.float32)     # lin1.bias
        self.W2 = s2 * jax.random.normal(k3, (L, H), jnp.float32)   # lin2.weight
        self.b2 = s2 * jax.random.normal(k4, (L,), jnp.float32)     # lin2.bias

        # ---- kernel-layout parameter views: transpose + zero-pad to (8,128) ----
        self.Dp = _round_up(D, 128)
        self.Hp = _round_up(H, 128)
        self.Lp = _round_up(L, 128)

        self.W1t = jnp.zeros((self.Dp, self.Hp), jnp.float32).at[:D, :H].set(self.W1.T)
        self.b1p = jnp.zeros((1, self.Hp), jnp.float32).at[0, :H].set(self.b1)
        self.W2t = jnp.zeros((self.Hp, self.Lp), jnp.float32).at[:H, :L].set(self.W2.T)
        self.b2p = jnp.zeros((1, self.Lp), jnp.float32).at[0, :L].set(self.b2)

    def __call__(self, x):
        B, D = x.shape
        assert D == self.embed_dim
        Dp, Hp, Lp = self.Dp, self.Hp, self.Lp

        # Batch tile: up to 512 rows per grid step (biggest that comfortably
        # fits double-buffered VMEM at these feature widths); pad batch so TB
        # divides it.
        TB = min(512, _round_up(B, 8))
        B_pad = _round_up(B, TB)

        x = x.astype(jnp.float32)
        if B_pad != B or Dp != D:
            xp = jnp.zeros((B_pad, Dp), jnp.float32).at[:B, :D].set(x)
        else:
            xp = x

        out_pad = pl.pallas_call(
            _mlp_kernel,
            out_shape=jax.ShapeDtypeStruct((B_pad, Lp), jnp.float32),
            grid_spec=pltpu.PrefetchScalarGridSpec(
                num_scalar_prefetch=0,
                grid=(B_pad // TB,),
                in_specs=[
                    pl.BlockSpec((TB, Dp), lambda b: (b, 0)),
                    pl.BlockSpec((Dp, Hp), lambda b: (0, 0)),
                    pl.BlockSpec((1, Hp), lambda b: (0, 0)),
                    pl.BlockSpec((Hp, Lp), lambda b: (0, 0)),
                    pl.BlockSpec((1, Lp), lambda b: (0, 0)),
                ],
                out_specs=pl.BlockSpec((TB, Lp), lambda b: (b, 0)),
            ),
            compiler_params=pltpu.CompilerParams(
                dimension_semantics=("parallel",),
                vmem_limit_bytes=64 << 20),
        )(xp, self.W1t, self.b1p, self.W2t, self.b2p)

        return out_pad[:B, :self.out_dim]

    # plain-JAX reference (mirrors the PyTorch forward) for validation
    def reference(self, x):
        x = x.astype(jnp.float32)
        h = jnp.maximum(x @ self.W1.T + self.b1, 0.0)
        h = h.reshape(x.shape[0], -1)            # view(batch, -1) (no-op for 2-D x)
        return h @ self.W2.T + self.b2


if __name__ == "__main__":
    # small shapes consistent with the module: x is (batch, embed_dim)
    B, embed_dim = 2, 256
    latent_dim, latent_dim_disc = 8, 3

    key = jax.random.PRNGKey(0)
    param_key, data_key = jax.random.split(key)

    enc = Encoder1DSentPallas(embed_dim, latent_dim, latent_dim_disc,
                              key=param_key)
    x = jax.random.normal(data_key, (B, embed_dim), jnp.float32)

    out = jax.block_until_ready(enc(x))
    ref = jax.block_until_ready(enc.reference(x))

    assert out.shape == (B, 2 * latent_dim + latent_dim_disc), out.shape
    assert jnp.allclose(out, ref, atol=1e-4, rtol=1e-4), (out, ref)
    print("KERNEL_OK")
</pallas_src>

<mosaic_0001>
module attributes {stable_mosaic.version = 11 : i64} {
  func.func @_mlp_kernel(%arg0: i32, %arg1: memref<8x256xf32, #tpu.memory_space<vmem>>, %arg2: memref<256x128xf32, #tpu.memory_space<vmem>>, %arg3: memref<1x128xf32, #tpu.memory_space<vmem>>, %arg4: memref<128x128xf32, #tpu.memory_space<vmem>>, %arg5: memref<1x128xf32, #tpu.memory_space<vmem>>, %arg6: memref<8x128xf32, #tpu.memory_space<vmem>>) attributes {dimension_semantics = [#tpu.dimension_semantics<parallel>], iteration_bounds = array<i64: 1>, scalar_prefetch = 0 : i64, scratch_operands = 0 : i64, tpu.core_type = #tpu.core_type<tc>, window_params = [{transform_indices = @transform_0, window_bounds = array<i64: 8, 256>}, {pipeline_mode = #tpu.pipeline_mode<synchronous>, transform_indices = @transform_1, window_bounds = array<i64: 256, 128>}, {pipeline_mode = #tpu.pipeline_mode<synchronous>, transform_indices = @transform_2, window_bounds = array<i64: 1, 128>}, {pipeline_mode = #tpu.pipeline_mode<synchronous>, transform_indices = @transform_3, window_bounds = array<i64: 128, 128>}, {pipeline_mode = #tpu.pipeline_mode<synchronous>, transform_indices = @transform_4, window_bounds = array<i64: 1, 128>}, {transform_indices = @transform_5, window_bounds = array<i64: 8, 128>}]} {
    %c0 = arith.constant 0 : index
    %c0_0 = arith.constant 0 : index
    %0 = vector.load %arg1[%c0, %c0_0] : memref<8x256xf32, #tpu.memory_space<vmem>>, vector<8x256xf32>
    %c0_1 = arith.constant 0 : index
    %c0_2 = arith.constant 0 : index
    %1 = vector.load %arg2[%c0_1, %c0_2] : memref<256x128xf32, #tpu.memory_space<vmem>>, vector<256x128xf32>
    %cst = arith.constant dense<0.000000e+00> : vector<8x128xf32>
    %2 = tpu.matmul %0, %1, %cst {dimension_numbers = #tpu.dot_dimension_numbers<[1], [0], [0], [1], [0, 0, 1, 1], [], []>} : vector<8x256xf32>, vector<256x128xf32>, vector<8x128xf32> -> vector<8x128xf32>
    %c0_3 = arith.constant 0 : index
    %c0_4 = arith.constant 0 : index
    %3 = vector.load %arg3[%c0_3, %c0_4] : memref<1x128xf32, #tpu.memory_space<vmem>>, vector<1x128xf32>
    %4 = vector.broadcast %3 : vector<1x128xf32> to vector<8x128xf32>
    %5 = arith.addf %2, %4 : vector<8x128xf32>
    %cst_5 = arith.constant 0.000000e+00 : f32
    %6 = vector.broadcast %cst_5 : f32 to vector<8x128xf32>
    %7 = arith.maximumf %5, %6 : vector<8x128xf32>
    %c0_6 = arith.constant 0 : index
    %c0_7 = arith.constant 0 : index
    %8 = vector.load %arg4[%c0_6, %c0_7] : memref<128x128xf32, #tpu.memory_space<vmem>>, vector<128x128xf32>
    %cst_8 = arith.constant dense<0.000000e+00> : vector<8x128xf32>
    %9 = tpu.matmul %7, %8, %cst_8 {dimension_numbers = #tpu.dot_dimension_numbers<[1], [0], [0], [1], [0, 0, 1, 1], [], []>} : vector<8x128xf32>, vector<128x128xf32>, vector<8x128xf32> -> vector<8x128xf32>
    %c0_9 = arith.constant 0 : index
    %c0_10 = arith.constant 0 : index
    %10 = vector.load %arg5[%c0_9, %c0_10] : memref<1x128xf32, #tpu.memory_space<vmem>>, vector<1x128xf32>
    %11 = vector.broadcast %10 : vector<1x128xf32> to vector<8x128xf32>
    %12 = arith.addf %9, %11 : vector<8x128xf32>
    %c0_11 = arith.constant 0 : index
    %c0_12 = arith.constant 0 : index
    %13 = vector.load %arg6[%c0_11, %c0_12] : memref<8x128xf32, #tpu.memory_space<vmem>>, vector<8x128xf32>
    tpu.vector_store %arg6[%c0_11, %c0_12], %12 {strides = array<i32>} : memref<8x128xf32, #tpu.memory_space<vmem>>, vector<8x128xf32>,
    return
  }
  func.func @transform_0(%arg0: i32) -> (i32, i32) {
    %c0_i32 = arith.constant 0 : i32
    %c0_i32_0 = arith.constant 0 : i32
    return %arg0, %c0_i32 : i32, i32
  }
  func.func @transform_1(%arg0: i32) -> (i32, i32) {
    %c0_i32 = arith.constant 0 : i32
    %c0_i32_0 = arith.constant 0 : i32
    %c0_i32_1 = arith.constant 0 : i32
    return %c0_i32, %c0_i32_0 : i32, i32
  }
  func.func @transform_2(%arg0: i32) -> (i32, i32) {
    %c0_i32 = arith.constant 0 : i32
    %c0_i32_0 = arith.constant 0 : i32
    %c0_i32_1 = arith.constant 0 : i32
    return %c0_i32, %c0_i32_0 : i32, i32
  }
  func.func @transform_3(%arg0: i32) -> (i32, i32) {
    %c0_i32 = arith.constant 0 : i32
    %c0_i32_0 = arith.constant 0 : i32
    %c0_i32_1 = arith.constant 0 : i32
    return %c0_i32, %c0_i32_0 : i32, i32
  }
  func.func @transform_4(%arg0: i32) -> (i32, i32) {
    %c0_i32 = arith.constant 0 : i32
    %c0_i32_0 = arith.constant 0 : i32
    %c0_i32_1 = arith.constant 0 : i32
    return %c0_i32, %c0_i32_0 : i32, i32
  }
  func.func @transform_5(%arg0: i32) -> (i32, i32) {
    %c0_i32 = arith.constant 0 : i32
    %c0_i32_0 = arith.constant 0 : i32
    return %arg0, %c0_i32 : i32, i32
  }
}

</mosaic_0001>

<bundles_post_ra>
// kernel: tpu_custom_call.1
= control target key start
LH: loop header
LB: loop body
LE: loop exit
PB: predicated region body
PF: predicated region fallthrough
CT: control target
= control target key end

     0   :  { %10 = vsyncpa [#allocation3], 0  ;;  %s368_s0 = inlined_call_operand.hbm [shape: f32[8,256], index: 0, kind: input, shape index: {}]   ;;  %s369_s1 = inlined_call_operand.hbm [shape: f32[256,128], index: 1, kind: input, shape index: {}]   ;;  %s370_s2 = inlined_call_operand.vmem [shape: f32[1,128], index: 2, kind: input, shape index: {}]   ;;  %s371_s3 = inlined_call_operand.hbm [shape: f32[128,128], index: 3, kind: input, shape index: {}]   ;;  %s372_s4 = inlined_call_operand.vmem [shape: f32[1,128], index: 4, kind: input, shape index: {}]   ;;  %s373_s5 = inlined_call_operand.hbm [shape: f32[8,128], index: 5, kind: output, shape index: {}]  }
   0x1   :  { %11 = vsyncpa [#allocation6], 0  ;;  %s28_s20 = sshll.u32 %s369_s1, 4  ;;  %s29_s20 = int_to_ptr.hbm [resolvable:$true] %s28_s20 }
   0x2   :  { %12 = vsyncpa [#allocation4], 0  ;;  %s314_s21 = smov [#allocation5]   ;;  %s18_s25 = sshll.u32 %s368_s0, 4  ;;  %s19_s25 = int_to_ptr.hbm [resolvable:$true] %s18_s25 }
   0x3   :  { %s30_s22 = sshll.u32 %s314_s21, 4  ;;  %s315_s26 = smov 128   ;;  %s31_s22 = int_to_ptr.vmem [resolvable:$true] %s30_s22 }
   0x4   :  { %s316_s27 = smov 8   ;;  %s317_s28 = smov [#allocation2]  }
   0x5   :  { %36 = dma.hbm_to_vmem [thread:$0]  %s29_s20, 4096, %s31_s22, [#allocation6], %s315_s26, %s315_s26, %s316_s27  }
   0x6   :  { %s20_s29 = sshll.u32 %s317_s28, 4  ;;  %s43_s7 = sshll.u32 %s371_s3, 4  ;;  %s21_s29 = int_to_ptr.vmem [resolvable:$true] %s20_s29  ;;  %s44_s7 = int_to_ptr.hbm [resolvable:$true] %s43_s7 }
   0x7   :  { %23 = dma.hbm_to_vmem [thread:$0]  %s19_s25, 256, %s21_s29, [#allocation3]  }
   0x8   :  { %s318_s1 = smov [#allocation7]  }
   0x9   :  { %s45_s8 = sshll.u32 %s318_s1, 4  ;;  %s46_s8 = int_to_ptr.vmem [resolvable:$true] %s45_s8 }
   0xa   :  { %51 = dma.hbm_to_vmem [thread:$0]  %s44_s7, 2048, %s46_s8, [#allocation6], %s315_s26, %s315_s26, %s316_s27  }
   0xb   :  { %308 = dma.done.wait [#allocation3], 256  }
   0xc   :  { %309 = vsyncadd [#allocation3], 4294967040 }
   0xd   :  { %310 = dma.done.wait [#allocation6], 6144  }
   0xe   :  { %311 = vsyncadd [#allocation6], 4294961152  ;;  %v83_v0 = vld [vmem:[#allocation5 + $0x78] sm:$0xff]  ;;  %v82_v1 = vld [vmem:[#allocation5 + $0x70] sm:$0xff]  ;;  %s319_s11 = smov [#allocation8]   ;;  %s193_s15 = sshll.u32 %s373_s5, 4  ;;  %s194_s15 = int_to_ptr.hbm [resolvable:$true] %s193_s15 }
   0xf   :  { %v99_v2 = vld [vmem:[#allocation5 + $0xf8] sm:$0xff]  ;;  %104 = vmatpush.msra.mxu0 %v83_v0  ;;  %v98_v3 = vld [vmem:[#allocation5 + $0xf0] sm:$0xff]  ;;  %v81_v4 = vld [vmem:[#allocation5 + $0x68] sm:$0xff]  ;;  %s191_s12 = sshll.u32 %s319_s11, 4  ;;  %s192_s12 = int_to_ptr.vmem [resolvable:$true] %s191_s12 }
  0x10   :  { %124 = vmatpush.msra.mxu1 %v99_v2  ;;  %v97_v5 = vld [vmem:[#allocation5 + $0xe8] sm:$0xff]  ;;  %v80_v6 = vld [vmem:[#allocation5 + $0x60] sm:$0xff]  ;;  %v79_v8 = vld [vmem:[#allocation5 + $0x58] sm:$0xff] }
  0x11   :  { %105 = vmatpush.msra.mxu0 %v82_v1  ;;  %v96_v7 = vld [vmem:[#allocation5 + $0xe0] sm:$0xff]  ;;  %v95_v9 = vld [vmem:[#allocation5 + $0xd8] sm:$0xff]  ;;  %v78_v10 = vld [vmem:[#allocation5 + $0x50] sm:$0xff] }
  0x12   :  { %125 = vmatpush.msra.mxu1 %v98_v3  ;;  %v94_v11 = vld [vmem:[#allocation5 + $0xd0] sm:$0xff]  ;;  %v77_v12 = vld [vmem:[#allocation5 + $0x48] sm:$0xff]  ;;  %v160_v14 = vld [vmem:[#allocation7 + $0x78] sm:$0xff] }
  0x13   :  { %106 = vmatpush.msra.mxu0 %v81_v4  ;;  %v93_v13 = vld [vmem:[#allocation5 + $0xc8] sm:$0xff]  ;;  %v159_v15 = vld [vmem:[#allocation7 + $0x70] sm:$0xff]  ;;  %v76_v16 = vld [vmem:[#allocation5 + $0x40] sm:$0xff]  ;;  %165 = vmatpush.msra.mxu2 %v160_v14 }
  0x14   :  { %126 = vmatpush.msra.mxu1 %v97_v5  ;;  %v92_v17 = vld [vmem:[#allocation5 + $0xc0] sm:$0xff]  ;;  %v158_v18 = vld [vmem:[#allocation7 + $0x68] sm:$0xff]  ;;  %v75_v19 = vld [vmem:[#allocation5 + $0x38] sm:$0xff] }
  0x15   :  { %107 = vmatpush.msra.mxu0 %v80_v6  ;;  %v91_v20 = vld [vmem:[#allocation5 + $0xb8] sm:$0xff]  ;;  %166 = vmatpush.msra.mxu2 %v159_v15  ;;  %v157_v21 = vld [vmem:[#allocation7 + $0x60] sm:$0xff]  ;;  %v74_v22 = vld [vmem:[#allocation5 + $0x30] sm:$0xff] }
  0x16   :  { %127 = vmatpush.msra.mxu1 %v96_v7  ;;  %v90_v23 = vld [vmem:[#allocation5 + $0xb0] sm:$0xff]  ;;  %v156_v24 = vld [vmem:[#allocation7 + $0x58] sm:$0xff]  ;;  %v73_v25 = vld [vmem:[#allocation5 + $0x28] sm:$0xff] }
  0x17   :  { %108 = vmatpush.msra.mxu0 %v79_v8  ;;  %167 = vmatpush.msra.mxu2 %v158_v18  ;;  %v89_v26 = vld [vmem:[#allocation5 + $0xa8] sm:$0xff]  ;;  %v155_v27 = vld [vmem:[#allocation7 + $0x50] sm:$0xff]  ;;  %v72_v28 = vld [vmem:[#allocation5 + $0x20] sm:$0xff] }
  0x18   :  { %128 = vmatpush.msra.mxu1 %v95_v9  ;;  %v88_v29 = vld [vmem:[#allocation5 + $0xa0] sm:$0xff]  ;;  %v154_v30 = vld [vmem:[#allocation7 + $0x48] sm:$0xff]  ;;  %v71_v31 = vld [vmem:[#allocation5 + $0x18] sm:$0xff] }
  0x19   :  { %109 = vmatpush.msra.mxu0 %v78_v10  ;;  %168 = vmatpush.msra.mxu2 %v157_v21  ;;  %v87_v32 = vld [vmem:[#allocation5 + $0x98] sm:$0xff]  ;;  %v153_v33 = vld [vmem:[#allocation7 + $0x40] sm:$0xff]  ;;  %v70_v34 = vld [vmem:[#allocation5 + $0x10] sm:$0xff] }
  0x1a   :  { %129 = vmatpush.msra.mxu1 %v94_v11  ;;  %v86_v35 = vld [vmem:[#allocation5 + $0x90] sm:$0xff]  ;;  %v152_v36 = vld [vmem:[#allocation7 + $0x38] sm:$0xff]  ;;  %v69_v37 = vld [vmem:[#allocation5 + $0x8] sm:$0xff] }
  0x1b   :  { %110 = vmatpush.msra.mxu0 %v77_v12  ;;  %169 = vmatpush.msra.mxu2 %v156_v24  ;;  %v85_v38 = vld [vmem:[#allocation5 + $0x88] sm:$0xff]  ;;  %v151_v39 = vld [vmem:[#allocation7 + $0x30] sm:$0xff]  ;;  %v68_v40 = vld [vmem:[#allocation5] sm:$0xff] }
  0x1c   :  { %130 = vmatpush.msra.mxu1 %v93_v13  ;;  %v84_v41 = vld [vmem:[#allocation5 + $0x80] sm:$0xff]  ;;  %v66_v42 = vld [vmem:[#allocation2] sm:$0xff]  ;;  %v67_v43 = vld [vmem:[#allocation2 + $0x8] sm:$0xff] }
  0x1d   :  { %111 = vmatpush.msra.mxu0 %v76_v16  ;;  %170 = vmatpush.msra.mxu2 %v155_v27  ;;  %v150_v44 = vld [vmem:[#allocation7 + $0x28] sm:$0xff]  ;;  %v149_v45 = vld [vmem:[#allocation7 + $0x20] sm:$0xff]  ;;  %v148_v46 = vld [vmem:[#allocation7 + $0x18] sm:$0xff] }
  0x1e   :  { %131 = vmatpush.msra.mxu1 %v92_v17  ;;  %v147_v47 = vld [vmem:[#allocation7 + $0x10] sm:$0xff]  ;;  %v146_v48 = vld [vmem:[#allocation7 + $0x8] sm:$0xff]  ;;  %v145_v49 = vld [vmem:[#allocation7] sm:$0xff] }
  0x1f   :  { %112 = vmatpush.msra.mxu0 %v75_v19  ;;  %171 = vmatpush.msra.mxu2 %v154_v30  ;;  %v210_v50 = vld [vmem:[%s370_s2] ss:$0 sm:$0xff] }
  0x20   :  { %132 = vmatpush.msra.mxu1 %v91_v20  ;;  %v211_v56 = vld [vmem:[%s372_s4] ss:$0 sm:$0xff] }
  0x21   :  { %113 = vmatpush.msra.mxu0 %v74_v22  ;;  %172 = vmatpush.msra.mxu2 %v153_v33 }
  0x22   :  { %133 = vmatpush.msra.mxu1 %v90_v23 }
  0x23   :  { %114 = vmatpush.msra.mxu0 %v73_v25  ;;  %173 = vmatpush.msra.mxu2 %v152_v36 }
  0x24   :  { %134 = vmatpush.msra.mxu1 %v89_v26 }
  0x25   :  { %115 = vmatpush.msra.mxu0 %v72_v28  ;;  %174 = vmatpush.msra.mxu2 %v151_v39 }
  0x26   :  { %135 = vmatpush.msra.mxu1 %v88_v29 }
  0x27   :  { %116 = vmatpush.msra.mxu0 %v71_v31  ;;  %175 = vmatpush.msra.mxu2 %v150_v44 }
  0x28   :  { %136 = vmatpush.msra.mxu1 %v87_v32 }
  0x29   :  { %117 = vmatpush.msra.mxu0 %v70_v34  ;;  %176 = vmatpush.msra.mxu2 %v149_v45 }
  0x2a   :  { %137 = vmatpush.msra.mxu1 %v86_v35 }
  0x2b   :  { %118 = vmatpush.msra.mxu0 %v69_v37  ;;  %177 = vmatpush.msra.mxu2 %v148_v46 }
  0x2c   :  { %138 = vmatpush.msra.mxu1 %v85_v38 }
  0x2d   :  { %119 = vmatpush.msra.mxu0 %v68_v40  ;;  %178 = vmatpush.msra.mxu2 %v147_v47 }
  0x2e   :  { %139 = vmatpush.msra.mxu1 %v84_v41  ;;  %120 = vmatmul.f32.vlgmr.msra.gmra.mxu0 %v66_v42 }
  0x2f   :  { %140 = vmatmul.f32.vlgmr.msra.gmra.mxu1 %v67_v43  ;;  %179 = vmatpush.msra.mxu2 %v146_v48 }
  0x31   :  { %180 = vmatpush.msra.mxu2 %v145_v49 }
  0xab   :  { %v121_v51 = vpop.f32.mrf.mxu0 }
  0xac   :  { %v141_v52 = vpop.f32.mrf.mxu1  ;;  %v122_v53 = vadd.f32 %v210_v50, %v121_v51 }
  0xae   :  { %v142_v54 = vadd.f32 %v141_v52, %v122_v53 }
  0xb0   :  { %v144_v55 = vmax.f32 %v142_v54, 0.0 }
  0xb2   :  { %181 = vmatmul.f32.vlgmr.msra.gmra.mxu2 %v144_v55 }
 0x135   :  { %v182_v57 = vpop.f32.mrf.mxu2 }
 0x136   :  { %v183_v58 = vadd.f32 %v211_v56, %v182_v57 }
 0x138   :  { %185 = vst [vmem:[#allocation8] sm:$0xff] %v183_v58 }
 0x139   :  { %196 = dma.vmem_to_hbm [thread:$0]  %s192_s12, 128, %s194_s15, [#allocation4]  }
 0x13a   :  { %312 = dma.done.wait [#allocation4], 128  }
 0x13b   :  { %313 = vsyncadd [#allocation4], 4294967168 }
 0x13c   :  { %201 = vsyncpa [#allocation3], 1 }
 0x13d   :  { %202 = vsyncpa [#allocation6], 1 }
 0x13e   :  { %203 = vsyncpa [#allocation4], 1 }

</bundles_post_ra>
